<compile_context>
chip_gen: v7x
topology: tpu7x:2x2x1
jax: 0.10.0
libtpu: 0.0.40
codegen_flags: <defaults>
</compile_context>

<pallas_src>
import functools

import jax
import jax.numpy as jnp
from jax import lax
from jax.experimental import pallas as pl
from jax.experimental.pallas import tpu as pltpu

# ------------------------- loss hyper-parameters -------------------------
WEIGHT_CE = 1.0
WEIGHT_DICE = 1.0
SMOOTH = 1e-5          # soft_dice_kwargs['smooth'] (nnUNet default trainer value)
CLIP_MIN = 1e-8        # torch.clip(..., 1e-8) inside MemoryEfficientSoftDiceLoss

_LANES = 128
_TS_CAP = 128 * 1024                    # max spatial elements per block
_VMEM_INPUT_BUDGET = 12 * 1024 * 1024   # double-buffered x+y input blocks (all gens)
_SLAB_UNROLL = 8


def _round_up(x, m):
    return ((x + m - 1) // m) * m


def _accum_tile(x_ref, y_ref, o_ref, block_start, *, tr, ts, s_true, masked, unroll):
    """Accumulate I, P, G, BCE partial sums of one (tr, ts) tile into o_ref[0, 0..3]."""
    n_slabs = ts // _LANES

    def body(q, carry):
        part_i, part_p, part_g, part_b = carry
        lo = q * _LANES
        sl = pl.ds(pl.multiple_of(lo, _LANES), _LANES)
        xs = x_ref[:, sl].astype(jnp.float32)
        ys = y_ref[:, sl].astype(jnp.float32)
        # shared transcendental: e = exp(-|x|) feeds both sigmoid and softplus
        e = jnp.exp(-jnp.abs(xs))
        ope = 1.0 + e
        sig_abs = pl.reciprocal(ope, approx=True)          # sigmoid(|x|) on the EUP
        p = jnp.where(xs >= 0, sig_abs, 1.0 - sig_abs)     # sigmoid(x)
        bce = jnp.maximum(xs, 0.0) - xs * ys + jnp.log(ope)  # stable BCEWithLogits
        if masked:
            # only emitted for the (single) partial block of a ragged spatial size
            col = block_start + lo + lax.broadcasted_iota(jnp.int32, (tr, _LANES), 1)
            valid = col < s_true
            p = jnp.where(valid, p, 0.0)
            ys = jnp.where(valid, ys, 0.0)
            bce = jnp.where(valid, bce, 0.0)
        return (part_i + p * ys, part_p + p, part_g + ys, part_b + bce)

    zero = jnp.zeros((tr, _LANES), jnp.float32)
    part_i, part_p, part_g, part_b = lax.fori_loop(
        0, n_slabs, body, (zero, zero, zero, zero), unroll=unroll)

    o_ref[0, 0, :, :] += part_i
    o_ref[0, 1, :, :] += part_p
    o_ref[0, 2, :, :] += part_g
    o_ref[0, 3, :, :] += part_b


def _dc_bce_kernel(x_ref, y_ref, o_ref, *, tr, ts, s_true, nspb, ragged, unroll):
    """x_ref/y_ref: (tr, ts) logits / targets (native dtypes).
    o_ref: (1, 4, tr, 128) f32 lane-wide accumulators (I, P, G, BCE), resident across
    the spatial (reduction) grid axis."""
    k = pl.program_id(2)

    @pl.when(k == 0)
    def _init():
        o_ref[...] = jnp.zeros_like(o_ref)

    # unclamped global start column of this logical block (clamped duplicates >= s_true)
    block_start = (pl.program_id(0) * nspb + k) * ts

    if ragged:
        full_valid = block_start + ts <= s_true
        partial = jnp.logical_and(block_start < s_true, jnp.logical_not(full_valid))
        # fully-out-of-range duplicate blocks (clamped index_map) skip compute entirely

        @pl.when(full_valid)
        def _full():
            _accum_tile(x_ref, y_ref, o_ref, block_start,
                        tr=tr, ts=ts, s_true=s_true, masked=False, unroll=unroll)

        @pl.when(partial)
        def _partial():
            _accum_tile(x_ref, y_ref, o_ref, block_start,
                        tr=tr, ts=ts, s_true=s_true, masked=True, unroll=unroll)
    else:
        _accum_tile(x_ref, y_ref, o_ref, block_start,
                    tr=tr, ts=ts, s_true=s_true, masked=False, unroll=unroll)


def dc_and_bce_loss(net_output: jax.Array, target: jax.Array) -> jax.Array:
    """net_output, target: (B, C, *spatial); target in {0,1} (any float dtype).
    Returns scalar combined loss (f32)."""
    B, C = int(net_output.shape[0]), int(net_output.shape[1])
    S = 1
    for d in net_output.shape[2:]:
        S *= int(d)
    BC = B * C

    # Free reshapes only; NO dtype cast, NO spatial padding copy.
    x2d = net_output.reshape(BC, S)
    y2d = target.reshape(BC, S)

    # ---- rows per block: take the whole (small) row dim -> no row-pad copy ----
    if BC <= 32:
        tr, bc_pad = BC, BC
    else:
        tr = next((t for t in (32, 16, 8) if BC % t == 0), 8)
        bc_pad = _round_up(BC, tr)
        if bc_pad != BC:
            # TODO(synk): rare full-copy row pad for large BC not divisible by 8/16/32.
            x2d = jnp.pad(x2d, ((0, bc_pad - BC), (0, 0)))
            y2d = jnp.pad(y2d, ((0, bc_pad - BC), (0, 0)))
    n_rb = bc_pad // tr

    # ---- spatial tile: MiB-scale, bounded by a cross-generation VMEM budget ----
    x_b = jnp.dtype(x2d.dtype).itemsize
    y_b = jnp.dtype(y2d.dtype).itemsize
    ts = _VMEM_INPUT_BUDGET // (2 * tr * (x_b + y_b))
    ts = max(_LANES, (ts // _LANES) * _LANES)
    ts = min(ts, _TS_CAP, _round_up(S, _LANES))

    n_sb_total = pl.cdiv(S, ts)             # spatial blocks covering S
    n_splits = 2 if n_sb_total >= 2 else 1  # give the 2nd TC work on v7x
    nspb = pl.cdiv(n_sb_total, n_splits)    # spatial blocks per split
    ragged = (S % ts != 0) or (n_splits * nspb != n_sb_total)
    unroll = max(1, min(_SLAB_UNROLL, ts // _LANES))

    kernel = functools.partial(_dc_bce_kernel, tr=tr, ts=ts, s_true=S,
                               nspb=nspb, ragged=ragged, unroll=unroll)

    last_blk = n_sb_total - 1
    x_spec = pl.BlockSpec((tr, ts),
                          lambda s, i, k: (i, jnp.minimum(s * nspb + k, last_blk)))
    y_spec = pl.BlockSpec((tr, ts),
                          lambda s, i, k: (i, jnp.minimum(s * nspb + k, last_blk)))
    out_spec = pl.BlockSpec((1, 4, tr, _LANES), lambda s, i, k: (s, 0, i, 0))

    in_buf_bytes = 2 * tr * ts * (x_b + y_b)        # double-buffered x + y blocks
    out_buf_bytes = 2 * 4 * tr * _LANES * 4
    vmem_limit = int(min(max(in_buf_bytes + out_buf_bytes + (2 << 20), 16 << 20),
                         30 << 20))

    n_elem = BC * S
    cost = pl.CostEstimate(
        flops=16 * n_elem,
        transcendentals=3 * n_elem,                  # exp, reciprocal, log
        bytes_accessed=n_elem * (x_b + y_b) + n_splits * 4 * bc_pad * _LANES * 4,
    )

    partials = pl.pallas_call(
        kernel,
        out_shape=jax.ShapeDtypeStruct((n_splits, 4, bc_pad, _LANES), jnp.float32),
        grid_spec=pltpu.PrefetchScalarGridSpec(
            num_scalar_prefetch=0,
            grid=(n_splits, n_rb, nspb),             # reduction (spatial) axis last
            in_specs=[x_spec, y_spec],
            out_specs=out_spec,
        ),
        compiler_params=pltpu.CompilerParams(
            dimension_semantics=("parallel", "parallel", "arbitrary"),
            vmem_limit_bytes=vmem_limit,
        ),
        cost_estimate=cost,
    )(x2d, y2d)

    # ---- tiny JAX epilogue: reduce lanes/splits, form dice ratio & BCE mean ----
    sums = jnp.sum(partials, axis=(0, 3))            # (4, bc_pad)
    inter = sums[0, :BC]
    pred = sums[1, :BC]
    gt = sums[2, :BC]
    bce = sums[3, :BC]
    dc = (2.0 * inter + SMOOTH) / jnp.maximum(pred + gt + SMOOTH, CLIP_MIN)
    dc_loss = -jnp.mean(dc)
    ce_loss = jnp.sum(bce) / (BC * S)
    return WEIGHT_CE * ce_loss + WEIGHT_DICE * dc_loss


def _reference_loss(net_output, target):
    """Pure-JAX reference mirroring the PyTorch module (exact sigmoid)."""
    x = net_output.astype(jnp.float32)
    y = target.astype(jnp.float32)
    p = jax.nn.sigmoid(x)
    axes = tuple(range(2, x.ndim))
    intersect = jnp.sum(p * y, axis=axes)
    sum_pred = jnp.sum(p, axis=axes)
    sum_gt = jnp.sum(y, axis=axes)
    dc = (2.0 * intersect + SMOOTH) / jnp.maximum(sum_pred + sum_gt + SMOOTH, CLIP_MIN)
    dc_loss = -jnp.mean(dc)
    bce = jnp.maximum(x, 0.0) - x * y + jnp.log1p(jnp.exp(-jnp.abs(x)))
    ce_loss = jnp.mean(bce)
    return WEIGHT_CE * ce_loss + WEIGHT_DICE * dc_loss


if __name__ == "__main__":
    key = jax.random.PRNGKey(0)
    k1, k2, k3, k4, k5, k6 = jax.random.split(key, 6)

    # Case 1: tile-aligned f32, (B, C, H, W) = (2, 4, 16, 16).
    x1 = jax.random.normal(k1, (2, 4, 16, 16), dtype=jnp.float32)
    y1 = (jax.random.uniform(k2, (2, 4, 16, 16)) > 0.5).astype(jnp.float32)
    l1 = jax.block_until_ready(dc_and_bce_loss(x1, y1))
    r1 = jax.block_until_ready(_reference_loss(x1, y1))
    # tolerance accounts for the approx-reciprocal sigmoid on the EUP
    assert jnp.allclose(l1, r1, atol=2e-3, rtol=2e-3), (l1, r1)

    # Case 2: ragged spatial + bf16 logits/targets (masked partial block, native dtype).
    x2 = jax.random.normal(k3, (2, 3, 10, 13), dtype=jnp.float32).astype(jnp.bfloat16)
    y2 = (jax.random.uniform(k4, (2, 3, 10, 13)) > 0.5).astype(jnp.bfloat16)
    l2 = jax.block_until_ready(dc_and_bce_loss(x2, y2))
    r2 = jax.block_until_ready(_reference_loss(x2, y2))
    assert jnp.allclose(l2, r2, atol=2e-3, rtol=2e-3), (l2, r2)

    # Case 3: larger ragged spatial -> multiple spatial blocks, 2-way core split,
    # clamped duplicate block and masked tail all exercised.
    x3 = jax.random.normal(k5, (1, 2, 329, 800), dtype=jnp.float32)
    y3 = (jax.random.uniform(k6, (1, 2, 329, 800)) > 0.5).astype(jnp.float32)
    l3 = jax.block_until_ready(dc_and_bce_loss(x3, y3))
    r3 = jax.block_until_ready(_reference_loss(x3, y3))
    assert jnp.allclose(l3, r3, atol=2e-3, rtol=2e-3), (l3, r3)

    print("KERNEL_OK")
</pallas_src>

<mosaic_0001>
module attributes {stable_mosaic.version = 11 : i64} {
  func.func @_dc_bce_kernel(%arg0: i32, %arg1: i32, %arg2: i32, %arg3: memref<8x256xf32, #tpu.memory_space<vmem>>, %arg4: memref<8x256xf32, #tpu.memory_space<vmem>>, %arg5: memref<1x4x8x128xf32, #tpu.memory_space<vmem>>) attributes {dimension_semantics = [#tpu.dimension_semantics<parallel>, #tpu.dimension_semantics<parallel>, #tpu.dimension_semantics<arbitrary>], iteration_bounds = array<i64: 1, 1, 1>, scalar_prefetch = 0 : i64, scratch_operands = 0 : i64, tpu.core_type = #tpu.core_type<tc>, window_params = [{transform_indices = @transform_0, window_bounds = array<i64: 8, 256>}, {transform_indices = @transform_1, window_bounds = array<i64: 8, 256>}, {transform_indices = @transform_2, window_bounds = array<i64: 1, 4, 8, 128>}]} {
    %c0_i32 = arith.constant 0 : i32
    %0 = arith.cmpi eq, %arg2, %c0_i32 : i32
    %1 = arith.extui %0 : i1 to i32
    %c0_i32_0 = arith.constant 0 : i32
    %2 = arith.cmpi ne, %1, %c0_i32_0 : i32
    scf.if %2 {
      %cst_45 = arith.constant 0.000000e+00 : f32
      %86 = vector.broadcast %cst_45 : f32 to vector<1x4x8x128xf32>
      %c0_46 = arith.constant 0 : index
      %c0_47 = arith.constant 0 : index
      %c0_48 = arith.constant 0 : index
      %c0_49 = arith.constant 0 : index
      %87 = vector.load %arg5[%c0_46, %c0_47, %c0_48, %c0_49] : memref<1x4x8x128xf32, #tpu.memory_space<vmem>>, vector<1x4x8x128xf32>
      tpu.vector_store %arg5[%c0_46, %c0_47, %c0_48, %c0_49], %86 {strides = array<i32>} : memref<1x4x8x128xf32, #tpu.memory_space<vmem>>, vector<1x4x8x128xf32>,
    } else {
    }
    %cst = arith.constant 0.000000e+00 : f32
    %3 = vector.broadcast %cst : f32 to vector<8x128xf32>
    %c0_i32_1 = arith.constant 0 : i32
    %c128_i32 = arith.constant 128 : i32
    %4 = arith.muli %c0_i32_1, %c128_i32 : i32
    %5 = tpu.assume_multiple %4, 128 : i32
    %c0 = arith.constant 0 : index
    %6 = arith.index_cast %5 : i32 to index
    %7 = vector.load %arg3[%c0, %6] : memref<8x256xf32, #tpu.memory_space<vmem>>, vector<8x128xf32>
    %c0_2 = arith.constant 0 : index
    %8 = arith.index_cast %5 : i32 to index
    %9 = vector.load %arg4[%c0_2, %8] : memref<8x256xf32, #tpu.memory_space<vmem>>, vector<8x128xf32>
    %10 = math.absf %7 : vector<8x128xf32>
    %cst_3 = arith.constant 0.000000e+00 : f32
    %11 = vector.broadcast %cst_3 : f32 to vector<8x128xf32>
    %12 = arith.subf %11, %10 : vector<8x128xf32>
    %13 = math.exp %12 : vector<8x128xf32>
    %cst_4 = arith.constant 1.000000e+00 : f32
    %14 = vector.broadcast %cst_4 : f32 to vector<8x128xf32>
    %15 = arith.addf %14, %13 : vector<8x128xf32>
    %16 = tpu.reciprocal %15 {approx = true} : vector<8x128xf32> -> vector<8x128xf32>
    %cst_5 = arith.constant 0.000000e+00 : f32
    %17 = vector.broadcast %cst_5 : f32 to vector<8x128xf32>
    %18 = arith.cmpf oge, %7, %17 : vector<8x128xf32>
    %cst_6 = arith.constant 1.000000e+00 : f32
    %19 = vector.broadcast %cst_6 : f32 to vector<8x128xf32>
    %20 = arith.subf %19, %16 : vector<8x128xf32>
    %21 = arith.select %18, %16, %20 : vector<8x128xi1>, vector<8x128xf32>
    %cst_7 = arith.constant 0.000000e+00 : f32
    %22 = vector.broadcast %cst_7 : f32 to vector<8x128xf32>
    %23 = arith.maximumf %7, %22 : vector<8x128xf32>
    %24 = arith.mulf %7, %9 : vector<8x128xf32>
    %25 = arith.subf %23, %24 : vector<8x128xf32>
    %26 = math.log %15 : vector<8x128xf32>
    %27 = arith.addf %25, %26 : vector<8x128xf32>
    %28 = arith.mulf %21, %9 : vector<8x128xf32>
    %29 = arith.addf %3, %28 : vector<8x128xf32>
    %30 = arith.addf %3, %21 : vector<8x128xf32>
    %31 = arith.addf %3, %9 : vector<8x128xf32>
    %32 = arith.addf %3, %27 : vector<8x128xf32>
    %c1_i32 = arith.constant 1 : i32
    %c128_i32_8 = arith.constant 128 : i32
    %33 = arith.muli %c1_i32, %c128_i32_8 : i32
    %34 = tpu.assume_multiple %33, 128 : i32
    %c0_9 = arith.constant 0 : index
    %35 = arith.index_cast %34 : i32 to index
    %36 = vector.load %arg3[%c0_9, %35] : memref<8x256xf32, #tpu.memory_space<vmem>>, vector<8x128xf32>
    %c0_10 = arith.constant 0 : index
    %37 = arith.index_cast %34 : i32 to index
    %38 = vector.load %arg4[%c0_10, %37] : memref<8x256xf32, #tpu.memory_space<vmem>>, vector<8x128xf32>
    %39 = math.absf %36 : vector<8x128xf32>
    %cst_11 = arith.constant 0.000000e+00 : f32
    %40 = vector.broadcast %cst_11 : f32 to vector<8x128xf32>
    %41 = arith.subf %40, %39 : vector<8x128xf32>
    %42 = math.exp %41 : vector<8x128xf32>
    %cst_12 = arith.constant 1.000000e+00 : f32
    %43 = vector.broadcast %cst_12 : f32 to vector<8x128xf32>
    %44 = arith.addf %43, %42 : vector<8x128xf32>
    %45 = tpu.reciprocal %44 {approx = true} : vector<8x128xf32> -> vector<8x128xf32>
    %cst_13 = arith.constant 0.000000e+00 : f32
    %46 = vector.broadcast %cst_13 : f32 to vector<8x128xf32>
    %47 = arith.cmpf oge, %36, %46 : vector<8x128xf32>
    %cst_14 = arith.constant 1.000000e+00 : f32
    %48 = vector.broadcast %cst_14 : f32 to vector<8x128xf32>
    %49 = arith.subf %48, %45 : vector<8x128xf32>
    %50 = arith.select %47, %45, %49 : vector<8x128xi1>, vector<8x128xf32>
    %cst_15 = arith.constant 0.000000e+00 : f32
    %51 = vector.broadcast %cst_15 : f32 to vector<8x128xf32>
    %52 = arith.maximumf %36, %51 : vector<8x128xf32>
    %53 = arith.mulf %36, %38 : vector<8x128xf32>
    %54 = arith.subf %52, %53 : vector<8x128xf32>
    %55 = math.log %44 : vector<8x128xf32>
    %56 = arith.addf %54, %55 : vector<8x128xf32>
    %57 = arith.mulf %50, %38 : vector<8x128xf32>
    %58 = arith.addf %29, %57 : vector<8x128xf32>
    %59 = arith.addf %30, %50 : vector<8x128xf32>
    %60 = arith.addf %31, %38 : vector<8x128xf32>
    %61 = arith.addf %32, %56 : vector<8x128xf32>
    %c2_i32 = arith.constant 2 : i32
    %c0_16 = arith.constant 0 : index
    %c0_17 = arith.constant 0 : index
    %c0_18 = arith.constant 0 : index
    %c0_19 = arith.constant 0 : index
    %62 = vector.load %arg5[%c0_16, %c0_17, %c0_18, %c0_19] : memref<1x4x8x128xf32, #tpu.memory_space<vmem>>, vector<1x1x8x128xf32>
    %63 = vector.shape_cast %62 : vector<1x1x8x128xf32> to vector<8x128xf32>
    %64 = arith.addf %63, %58 : vector<8x128xf32>
    %c0_20 = arith.constant 0 : index
    %c0_21 = arith.constant 0 : index
    %c0_22 = arith.constant 0 : index
    %c0_23 = arith.constant 0 : index
    %65 = vector.load %arg5[%c0_20, %c0_21, %c0_22, %c0_23] : memref<1x4x8x128xf32, #tpu.memory_space<vmem>>, vector<1x1x8x128xf32>
    %66 = vector.shape_cast %65 : vector<1x1x8x128xf32> to vector<8x128xf32>
    %67 = vector.shape_cast %64 : vector<8x128xf32> to vector<1x1x8x128xf32>
    tpu.vector_store %arg5[%c0_20, %c0_21, %c0_22, %c0_23], %67 {strides = array<i32>} : memref<1x4x8x128xf32, #tpu.memory_space<vmem>>, vector<1x1x8x128xf32>,
    %c0_24 = arith.constant 0 : index
    %c1 = arith.constant 1 : index
    %c0_25 = arith.constant 0 : index
    %c0_26 = arith.constant 0 : index
    %68 = vector.load %arg5[%c0_24, %c1, %c0_25, %c0_26] : memref<1x4x8x128xf32, #tpu.memory_space<vmem>>, vector<1x1x8x128xf32>
    %69 = vector.shape_cast %68 : vector<1x1x8x128xf32> to vector<8x128xf32>
    %70 = arith.addf %69, %59 : vector<8x128xf32>
    %c0_27 = arith.constant 0 : index
    %c1_28 = arith.constant 1 : index
    %c0_29 = arith.constant 0 : index
    %c0_30 = arith.constant 0 : index
    %71 = vector.load %arg5[%c0_27, %c1_28, %c0_29, %c0_30] : memref<1x4x8x128xf32, #tpu.memory_space<vmem>>, vector<1x1x8x128xf32>
    %72 = vector.shape_cast %71 : vector<1x1x8x128xf32> to vector<8x128xf32>
    %73 = vector.shape_cast %70 : vector<8x128xf32> to vector<1x1x8x128xf32>
    tpu.vector_store %arg5[%c0_27, %c1_28, %c0_29, %c0_30], %73 {strides = array<i32>} : memref<1x4x8x128xf32, #tpu.memory_space<vmem>>, vector<1x1x8x128xf32>,
    %c0_31 = arith.constant 0 : index
    %c2 = arith.constant 2 : index
    %c0_32 = arith.constant 0 : index
    %c0_33 = arith.constant 0 : index
    %74 = vector.load %arg5[%c0_31, %c2, %c0_32, %c0_33] : memref<1x4x8x128xf32, #tpu.memory_space<vmem>>, vector<1x1x8x128xf32>
    %75 = vector.shape_cast %74 : vector<1x1x8x128xf32> to vector<8x128xf32>
    %76 = arith.addf %75, %60 : vector<8x128xf32>
    %c0_34 = arith.constant 0 : index
    %c2_35 = arith.constant 2 : index
    %c0_36 = arith.constant 0 : index
    %c0_37 = arith.constant 0 : index
    %77 = vector.load %arg5[%c0_34, %c2_35, %c0_36, %c0_37] : memref<1x4x8x128xf32, #tpu.memory_space<vmem>>, vector<1x1x8x128xf32>
    %78 = vector.shape_cast %77 : vector<1x1x8x128xf32> to vector<8x128xf32>
    %79 = vector.shape_cast %76 : vector<8x128xf32> to vector<1x1x8x128xf32>
    tpu.vector_store %arg5[%c0_34, %c2_35, %c0_36, %c0_37], %79 {strides = array<i32>} : memref<1x4x8x128xf32, #tpu.memory_space<vmem>>, vector<1x1x8x128xf32>,
    %c0_38 = arith.constant 0 : index
    %c3 = arith.constant 3 : index
    %c0_39 = arith.constant 0 : index
    %c0_40 = arith.constant 0 : index
    %80 = vector.load %arg5[%c0_38, %c3, %c0_39, %c0_40] : memref<1x4x8x128xf32, #tpu.memory_space<vmem>>, vector<1x1x8x128xf32>
    %81 = vector.shape_cast %80 : vector<1x1x8x128xf32> to vector<8x128xf32>
    %82 = arith.addf %81, %61 : vector<8x128xf32>
    %c0_41 = arith.constant 0 : index
    %c3_42 = arith.constant 3 : index
    %c0_43 = arith.constant 0 : index
    %c0_44 = arith.constant 0 : index
    %83 = vector.load %arg5[%c0_41, %c3_42, %c0_43, %c0_44] : memref<1x4x8x128xf32, #tpu.memory_space<vmem>>, vector<1x1x8x128xf32>
    %84 = vector.shape_cast %83 : vector<1x1x8x128xf32> to vector<8x128xf32>
    %85 = vector.shape_cast %82 : vector<8x128xf32> to vector<1x1x8x128xf32>
    tpu.vector_store %arg5[%c0_41, %c3_42, %c0_43, %c0_44], %85 {strides = array<i32>} : memref<1x4x8x128xf32, #tpu.memory_space<vmem>>, vector<1x1x8x128xf32>,
    return
  }
  func.func @transform_0(%arg0: i32, %arg1: i32, %arg2: i32) -> (i32, i32) {
    %c1_i32 = arith.constant 1 : i32
    %0 = arith.muli %arg0, %c1_i32 : i32
    %1 = arith.addi %0, %arg2 : i32
    %c0_i32 = arith.constant 0 : i32
    %2 = arith.minsi %1, %c0_i32 : i32
    %c0_i32_0 = arith.constant 0 : i32
    return %arg1, %2 : i32, i32
  }
  func.func @transform_1(%arg0: i32, %arg1: i32, %arg2: i32) -> (i32, i32) {
    %c1_i32 = arith.constant 1 : i32
    %0 = arith.muli %arg0, %c1_i32 : i32
    %1 = arith.addi %0, %arg2 : i32
    %c0_i32 = arith.constant 0 : i32
    %2 = arith.minsi %1, %c0_i32 : i32
    %c0_i32_0 = arith.constant 0 : i32
    return %arg1, %2 : i32, i32
  }
  func.func @transform_2(%arg0: i32, %arg1: i32, %arg2: i32) -> (i32, i32, i32, i32) {
    %c0_i32 = arith.constant 0 : i32
    %c0_i32_0 = arith.constant 0 : i32
    %c0_i32_1 = arith.constant 0 : i32
    return %arg0, %c0_i32, %arg1, %c0_i32_0 : i32, i32, i32, i32
  }
}

</mosaic_0001>

<bundles_post_ra>
// kernel: tpu_custom_call.1
= control target key start
LH: loop header
LB: loop body
LE: loop exit
PB: predicated region body
PF: predicated region fallthrough
CT: control target
= control target key end

     0   :  { %7 = vsyncpa [#allocation3], 0  ;;  %s293_s0 = inlined_call_operand.hbm [shape: f32[8,256], index: 0, kind: input, shape index: {}]   ;;  %s294_s1 = inlined_call_operand.hbm [shape: f32[8,256], index: 1, kind: input, shape index: {}]   ;;  %s295_s2 = inlined_call_operand.hbm [shape: f32[1,4,8,128], index: 2, kind: output, shape index: {}]  }
   0x1   :  { %8 = vsyncpa [#allocation6], 0 }
   0x2   :  { %9 = vsyncpa [#allocation4], 0  ;;  %s237_s9 = smov [#allocation2]   ;;  %s238_s11 = smov [#allocation5]  }
   0x3   :  { %s22_s10 = sshll.u32 %s237_s9, 4  ;;  %s38_s12 = sshll.u32 %s238_s11, 4  ;;  %s23_s10 = int_to_ptr.vmem [resolvable:$true] %s22_s10  ;;  %s39_s12 = int_to_ptr.vmem [resolvable:$true] %s38_s12 }
   0x4   :  { %s165_s15 = scalar_lea.hbm %s293_s0, 256 }
   0x5   :  { %p166_p0 = scmp.ne.s32.totalorder %s293_s0, %s165_s15  ;;  %p169_p1 = scmp.lt.u32.totalorder %s165_s15, %s293_s0 }
   0x7   :  { %p171_p2 = pnand %p169_p1, %p166_p0 }
   0x9   :  { %174 = shalt.err (!%p171_p2)
}
   0xa   :  { %s175_s20 = scalar_lea.vmem %s23_s10, 256  ;;  %p180_p4 = scmp.lt.s32.totalorder %s23_s10, %s23_s10 }
   0xb   :  { %p176_p3 = scmp.ne.s32.totalorder %s23_s10, %s175_s20  ;;  %p181_p5 = scmp.lt.s32.totalorder %s175_s20, %s175_s20 }
   0xd   :  { %p182_p6 = por %p181_p5, %p180_p4 }
   0xf   :  { %p183_p7 = pnand %p182_p6, %p176_p3 }
  0x11   :  { %186 = shalt.err (!%p183_p7)
}
  0x12   :  { %25 = dma.hbm_to_vmem [thread:$0]  %s293_s0, 256, %s23_s10, [#allocation3]  }
  0x13   :  { %s187_s25 = scalar_lea.hbm %s294_s1, 256 }
  0x14   :  { %p188_p8 = scmp.ne.s32.totalorder %s294_s1, %s187_s25  ;;  %p191_p9 = scmp.lt.u32.totalorder %s187_s25, %s294_s1 }
  0x16   :  { %p193_p10 = pnand %p191_p9, %p188_p8 }
  0x18   :  { %196 = shalt.err (!%p193_p10)
}
  0x19   :  { %s197_s30 = scalar_lea.vmem %s39_s12, 256  ;;  %p202_p12 = scmp.lt.s32.totalorder %s39_s12, %s39_s12 }
  0x1a   :  { %p198_p11 = scmp.ne.s32.totalorder %s39_s12, %s197_s30  ;;  %p203_p13 = scmp.lt.s32.totalorder %s197_s30, %s197_s30 }
  0x1c   :  { %p204_p0 = por %p203_p13, %p202_p12 }
  0x1e   :  { %p205_p1 = pnand %p204_p0, %p198_p11 }
  0x20   :  { %208 = shalt.err (!%p205_p1)
}
  0x21   :  { %41 = dma.hbm_to_vmem [thread:$0]  %s294_s1, 256, %s39_s12, [#allocation6]  }
  0x22   :  { %231 = dma.done.wait [#allocation3], 256  }
  0x23   :  { %232 = vsyncadd [#allocation3], 4294967040 }
  0x24   :  { %233 = dma.done.wait [#allocation6], 256  }
  0x25   :  { %234 = vsyncadd [#allocation6], 4294967040  ;;  %v64_v0 = vld [vmem:[#allocation2] sm:$0xff]  ;;  %v87_v1 = vld [vmem:[#allocation2 + $0x8] sm:$0xff]  ;;  %s239_s1 = smov [#allocation7]  }
  0x26   :  { %v65_v2 = vld [vmem:[#allocation5] sm:$0xff]  ;;  %v66_v3 = vand.u32 2147483647, %v64_v0  ;;  %v89_v4 = vld [vmem:[#allocation5 + $0x8] sm:$0xff]  ;;  %v90_v5 = vand.u32 2147483647, %v87_v1 }
  0x27   :  { %v108_v6 = vadd.f32 %v89_v4, %v65_v2  ;;  %v75_v15 = vmax.f32 %v64_v0, 0.0  ;;  %v76_v16 = vmul.f32 %v65_v2, %v64_v0  ;;  %v99_v17 = vmax.f32 %v87_v1, 0.0  ;;  %s130_s4 = sshll.u32 %s239_s1, 4  ;;  %s131_s4 = int_to_ptr.vmem [resolvable:$true] %s130_s4 }
  0x28   :  { %v67_v7 = vsub.f32 0.0, %v66_v3  ;;  %v91_v8 = vsub.f32 0.0, %v90_v5  ;;  %v100_v18 = vmul.f32 %v89_v4, %v87_v1  ;;  %vm72_vm0 = vcmp.ge.f32.partialorder %v64_v0, 0.0  ;;  %s209_s5 = scalar_lea.vmem %s131_s4, 512  ;;  %p214_p3 = scmp.lt.s32.totalorder %s131_s4, %s131_s4 }
  0x29   :  { %120 = vst [vmem:[#allocation7 + $0x10] sm:$0xff] %v108_v6  ;;  %vm96_vm1 = vcmp.ge.f32.partialorder %v87_v1, 0.0  ;;  %v77_v22 = vsub.f32 %v75_v15, %v76_v16  ;;  %p210_p2 = scmp.ne.s32.totalorder %s131_s4, %s209_s5  ;;  %p215_p4 = scmp.lt.s32.totalorder %s209_s5, %s209_s5 }
  0x2a   :  { %v68_v9 = vmul.f32 1.442695, %v67_v7  ;;  %v92_v10 = vmul.f32 1.442695, %v91_v8  ;;  %v101_v25 = vsub.f32 %v99_v17, %v100_v18 }
  0x2b   :  { %p216_p5 = por %p215_p4, %p214_p3 }
  0x2c   :  { %153 = vpow2.f32 %v68_v9 }
  0x2d   :  { %155 = vpow2.f32 %v92_v10  ;;  %p217_p6 = pnand %p216_p5, %p210_p2 }
  0x36   :  { %v154_v11 = vpop.eup %153 }
  0x37   :  { %v156_v12 = vpop.eup %155  ;;  %v70_v13 = vadd.f32 1.0, %v154_v11 }
  0x38   :  { %v94_v14 = vadd.f32 1.0, %v156_v12 }
  0x39   :  { %157 = vrcp.f32 %v70_v13 }
  0x3a   :  { %159 = vrcp.f32 %v94_v14 }
  0x3b   :  { %161 = vlog2.f32 %v70_v13 }
  0x3c   :  { %163 = vlog2.f32 %v94_v14 }
  0x43   :  { %v158_v19 = vpop.eup %157 }
  0x44   :  { %v160_v20 = vpop.eup %159  ;;  %v73_v21 = vsub.f32 1.0, %v158_v19 }
  0x45   :  { %v162_v23 = vpop.eup %161  ;;  %v97_v24 = vsub.f32 1.0, %v160_v20 }
  0x46   :  { %v164_v26 = vpop.eup %163  ;;  %v74_v27 = vsel %vm72_vm0, %v158_v19, %v73_v21  ;;  %v79_v28 = vmul.f32 0.6931472, %v162_v23 }
  0x47   :  { %v81_v29 = vmul.f32 %v74_v27, %v65_v2  ;;  %v98_v30 = vsel %vm96_vm1, %v160_v20, %v97_v24  ;;  %v103_v31 = vmul.f32 0.6931472, %v164_v26 }
  0x48   :  { %v105_v32 = vmul.f32 %v98_v30, %v89_v4  ;;  %v107_v33 = vadd.f32 %v98_v30, %v74_v27  ;;  %v80_v34 = vadd.f32 %v79_v28, %v77_v22 }
  0x49   :  { %v104_v35 = vadd.f32 %v103_v31, %v101_v25 }
  0x4a   :  { %v106_v36 = vadd.f32 %v105_v32, %v81_v29  ;;  %116 = vst [vmem:[#allocation7 + $0x8] sm:$0xff] %v107_v33 }
  0x4b   :  { %v109_v37 = vadd.f32 %v104_v35, %v80_v34 }
  0x4c   :  { %112 = vst [vmem:[#allocation7] sm:$0xff] %v106_v36 }
  0x4d   :  { %124 = vst [vmem:[#allocation7 + $0x18] sm:$0xff] %v109_v37 }
  0x4e   :  { %220 = shalt.err (!%p217_p6)
}
  0x4f   :  { %s221_s8 = scalar_lea.hbm %s295_s2, 512 }
  0x50   :  { %p222_p7 = scmp.ne.s32.totalorder %s295_s2, %s221_s8  ;;  %p225_p8 = scmp.lt.u32.totalorder %s221_s8, %s295_s2 }
  0x52   :  { %p227_p9 = pnand %p225_p8, %p222_p7 }
  0x54   :  { %230 = shalt.err (!%p227_p9)
}
  0x55   :  { %s240_s13 = smov 128   ;;  %s241_s14 = smov 8  }
  0x56   :  { %136 = dma.vmem_to_hbm [thread:$0]  %s131_s4, 512, %s295_s2, [#allocation4], %s240_s13, %s240_s13, %s241_s14  }
  0x57   :  { %235 = dma.done.wait [#allocation4], 512  }
  0x58   :  { %236 = vsyncadd [#allocation4], 4294966784 }
  0x59   :  { %140 = vsyncpa [#allocation3], 1 }
  0x5a   :  { %141 = vsyncpa [#allocation6], 1 }
  0x5b   :  { %142 = vsyncpa [#allocation4], 1 }

</bundles_post_ra>
